<compile_context>
chip_gen: v7x
topology: tpu7x:2x2x1
jax: 0.10.0
libtpu: 0.0.40
codegen_flags: <defaults>
</compile_context>

<pallas_src>
import functools

import jax
import jax.numpy as jnp
from jax.experimental import pallas as pl
from jax.experimental.pallas import tpu as pltpu

# ----- module hyper-parameters (fixed by the PyTorch __init__) -----
C_IN = 8           # nn.Conv1d(8, 29, ...) hard-codes 8 input channels
C_OUT = 29         # and 29 output channels
C_OUT_PAD = 32     # pad to a full sublane tile -> unmasked stores
KERNEL_SIZE = 5
STRIDE = 1         # TODO(synk): stride>1 would need strided window slicing
NEG_SLOPE = 0.01   # F.leaky_relu default

_HALO = 128        # lane-aligned halo block; only the first K-1 lanes are used
_TL_MAX = 8192     # max lanes per grid step (~5 MiB/step VMEM incl. double-buffers)


def conv1d_leakyrelu_kernel(x_ref, xh_ref, w_ref, b_ref, o_ref, *, k_size, tl):
    """One lane tile of the batch-flattened conv + bias + leaky_relu.

    x_ref : (C_IN, tl)               flat input lanes [j*tl, (j+1)*tl)
    xh_ref: (C_IN, 128)              next 128 flat lanes (halo; first k_size-1 used)
    w_ref : (k_size, C_OUT_PAD, C_IN) per-tap weights
    b_ref : (C_OUT_PAD, 1)           bias (zero in padded rows)
    o_ref : (C_OUT_PAD, tl)          output tile (lane-dense, unmasked store)
    """
    x = x_ref[...]                                            # (C_IN, tl)
    # Accumulate over taps: K depth-C_IN MXU dots into one f32 accumulator.
    # Shifted windows are built per-tap from lane-sliced ref loads (+ halo);
    # the cross-lane shifts ride the XLU/VPU slots under the DMA/MXU and no
    # (K*C_IN, tl) stacked slab is ever materialized.
    acc = jnp.dot(w_ref[0], x, preferred_element_type=jnp.float32)
    for k in range(1, k_size):
        win = jnp.concatenate([x_ref[:, k:], xh_ref[:, :k]], axis=-1)  # (C_IN, tl)
        acc = acc + jnp.dot(w_ref[k], win, preferred_element_type=jnp.float32)
    y = acc + b_ref[...]                                      # broadcast (C_OUT_PAD,1)
    o_ref[...] = jnp.where(y > 0, y, NEG_SLOPE * y).astype(o_ref.dtype)


@jax.jit
def conv_layer_forward(x, weight, bias):
    """x: (N, C_IN, L) f32; weight: (C_OUT, C_IN, K); bias: (C_OUT,)."""
    n, c_in, length = x.shape
    assert c_in == C_IN
    k = KERNEL_SIZE
    l_out = (length - k) // STRIDE + 1
    assert l_out > 0

    # Per-batch segment: >= l_out + k - 1 (= length for stride 1) and a multiple
    # of 128 so batch boundaries stay lane-aligned after flattening.
    l_seg = int(pl.cdiv(length, 128)) * 128
    total_flat = n * l_seg

    # Lane-tile heuristic: as large as possible (amortize per-step overhead),
    # capped at _TL_MAX for VMEM headroom on every generation, but keep >= 2
    # grid steps when there are >= 2 lane blocks so both v7x TensorCores work.
    nb = total_flat // 128
    if total_flat <= _TL_MAX:
        tl = 128 * max(1, nb // 2) if nb >= 2 else 128
    else:
        tl = _TL_MAX
    num_tiles = int(pl.cdiv(total_flat, tl))
    flat_pad = num_tiles * tl

    # ---- wrapper-side layout plumbing only (no compute hoisted) ----
    # x: (N, C_IN, L) -> zero-pad length to l_seg -> flatten batch into lanes,
    # then pad to the tile grid plus one trailing 128-lane halo block.
    x_seg = jnp.pad(x, ((0, 0), (0, 0), (0, l_seg - length)))
    x_flat = jnp.transpose(x_seg, (1, 0, 2)).reshape(C_IN, total_flat)
    x_flat = jnp.pad(x_flat, ((0, 0), (0, flat_pad - total_flat + _HALO)))

    # weights: (C_OUT, C_IN, K) -> (K, C_OUT_PAD, C_IN); bias -> (C_OUT_PAD, 1)
    w3 = jnp.transpose(weight, (2, 0, 1))                      # (K, C_OUT, C_IN)
    w3 = jnp.pad(w3, ((0, 0), (0, C_OUT_PAD - C_OUT), (0, 0)))
    b2d = jnp.pad(bias, (0, C_OUT_PAD - C_OUT)).reshape(C_OUT_PAD, 1)

    kernel = functools.partial(conv1d_leakyrelu_kernel, k_size=k, tl=tl)
    halo_blk = tl // _HALO

    cost = pl.CostEstimate(
        flops=2 * n * l_out * C_OUT * C_IN * k,
        transcendentals=0,
        bytes_accessed=4 * (C_IN * (flat_pad + _HALO) + num_tiles * C_IN * _HALO
                            + k * C_OUT_PAD * C_IN + C_OUT_PAD
                            + C_OUT_PAD * flat_pad))

    out_flat = pl.pallas_call(
        kernel,
        out_shape=jax.ShapeDtypeStruct((C_OUT_PAD, flat_pad), x.dtype),
        grid_spec=pltpu.PrefetchScalarGridSpec(
            num_scalar_prefetch=0,
            grid=(num_tiles,),
            in_specs=[
                # main window: flat lanes [j*tl, (j+1)*tl)
                pl.BlockSpec((C_IN, tl), lambda j: (0, j)),
                # halo: next 128 flat lanes (lane-aligned block index)
                pl.BlockSpec((C_IN, _HALO), lambda j: (0, (j + 1) * halo_blk)),
                pl.BlockSpec((k, C_OUT_PAD, C_IN), lambda j: (0, 0, 0)),
                pl.BlockSpec((C_OUT_PAD, 1), lambda j: (0, 0)),
            ],
            out_specs=pl.BlockSpec((C_OUT_PAD, tl), lambda j: (0, j)),
        ),
        compiler_params=pltpu.CompilerParams(
            dimension_semantics=("parallel",)),
        cost_estimate=cost,
    )(x_flat, x_flat, w3, b2d)

    # un-flatten: drop tile padding, split batch back out, drop channel/length pad
    out = out_flat[:, :total_flat].reshape(C_OUT_PAD, n, l_seg)
    out = jnp.transpose(out, (1, 0, 2))[:, :C_OUT, :l_out]
    return out


def _reference(x, weight, bias):
    # pure-JAX reference: lax conv with PyTorch NCW / OIW conventions
    y = jax.lax.conv_general_dilated(
        x, weight, window_strides=(STRIDE,), padding="VALID",
        dimension_numbers=("NCW", "OIW", "NCW"))
    y = y + bias.reshape(1, C_OUT, 1)
    return jnp.where(y > 0, y, NEG_SLOPE * y)


if __name__ == "__main__":
    key = jax.random.PRNGKey(0)
    k_x, k_w, k_b = jax.random.split(key, 3)

    N, L = 2, 32
    x = jax.random.normal(k_x, (N, C_IN, L), dtype=jnp.float32)

    # deterministic parameter init (PyTorch-style uniform bound 1/sqrt(fan_in))
    bound = 1.0 / jnp.sqrt(C_IN * KERNEL_SIZE)
    weight = jax.random.uniform(k_w, (C_OUT, C_IN, KERNEL_SIZE),
                                minval=-bound, maxval=bound, dtype=jnp.float32)
    bias = jax.random.uniform(k_b, (C_OUT,),
                              minval=-bound, maxval=bound, dtype=jnp.float32)

    out = conv_layer_forward(x, weight, bias)
    out = jax.block_until_ready(out)

    ref = _reference(x, weight, bias)
    assert out.shape == (N, C_OUT, (L - KERNEL_SIZE) // STRIDE + 1)
    assert jnp.allclose(out, ref, atol=1e-4, rtol=1e-4), "mismatch vs reference"

    print("KERNEL_OK")
</pallas_src>

<mosaic_0001>
module attributes {stable_mosaic.version = 11 : i64} {
  func.func @conv1d_leakyrelu_kernel(%arg0: i32, %arg1: memref<8x128xf32, #tpu.memory_space<vmem>>, %arg2: memref<8x128xf32, #tpu.memory_space<vmem>>, %arg3: memref<5x32x8xf32, #tpu.memory_space<vmem>>, %arg4: memref<32x1xf32, #tpu.memory_space<vmem>>, %arg5: memref<32x128xf32, #tpu.memory_space<vmem>>) attributes {dimension_semantics = [#tpu.dimension_semantics<parallel>], iteration_bounds = array<i64: 2>, scalar_prefetch = 0 : i64, scratch_operands = 0 : i64, tpu.core_type = #tpu.core_type<tc>, window_params = [{transform_indices = @transform_0, window_bounds = array<i64: 8, 128>}, {transform_indices = @transform_1, window_bounds = array<i64: 8, 128>}, {pipeline_mode = #tpu.pipeline_mode<synchronous>, transform_indices = @transform_2, window_bounds = array<i64: 5, 32, 8>}, {pipeline_mode = #tpu.pipeline_mode<synchronous>, transform_indices = @transform_3, window_bounds = array<i64: 32, 1>}, {transform_indices = @transform_4, window_bounds = array<i64: 32, 128>}]} {
    %c0 = arith.constant 0 : index
    %c0_0 = arith.constant 0 : index
    %0 = vector.load %arg1[%c0, %c0_0] : memref<8x128xf32, #tpu.memory_space<vmem>>, vector<8x128xf32>
    %c0_1 = arith.constant 0 : index
    %c0_2 = arith.constant 0 : index
    %c0_3 = arith.constant 0 : index
    %1 = vector.load %arg3[%c0_1, %c0_2, %c0_3] : memref<5x32x8xf32, #tpu.memory_space<vmem>>, vector<1x32x8xf32>
    %2 = vector.shape_cast %1 : vector<1x32x8xf32> to vector<32x8xf32>
    %cst = arith.constant dense<0.000000e+00> : vector<32x128xf32>
    %3 = tpu.matmul %2, %0, %cst {dimension_numbers = #tpu.dot_dimension_numbers<[1], [0], [0], [1], [0, 0, 1, 1], [], []>} : vector<32x8xf32>, vector<8x128xf32>, vector<32x128xf32> -> vector<32x128xf32>
    %c0_4 = arith.constant 0 : index
    %c1 = arith.constant 1 : index
    %4 = vector.load %arg1[%c0_4, %c1] : memref<8x128xf32, #tpu.memory_space<vmem>>, vector<8x127xf32>
    %c0_5 = arith.constant 0 : index
    %c0_6 = arith.constant 0 : index
    %5 = vector.load %arg2[%c0_5, %c0_6] : memref<8x128xf32, #tpu.memory_space<vmem>>, vector<8x1xf32>
    %6 = tpu.concatenate %4, %5 in 1 : vector<8x127xf32>, vector<8x1xf32> -> vector<8x128xf32>
    %c1_7 = arith.constant 1 : index
    %c0_8 = arith.constant 0 : index
    %c0_9 = arith.constant 0 : index
    %7 = vector.load %arg3[%c1_7, %c0_8, %c0_9] : memref<5x32x8xf32, #tpu.memory_space<vmem>>, vector<1x32x8xf32>
    %8 = vector.shape_cast %7 : vector<1x32x8xf32> to vector<32x8xf32>
    %cst_10 = arith.constant dense<0.000000e+00> : vector<32x128xf32>
    %9 = tpu.matmul %8, %6, %cst_10 {dimension_numbers = #tpu.dot_dimension_numbers<[1], [0], [0], [1], [0, 0, 1, 1], [], []>} : vector<32x8xf32>, vector<8x128xf32>, vector<32x128xf32> -> vector<32x128xf32>
    %10 = arith.addf %3, %9 : vector<32x128xf32>
    %c0_11 = arith.constant 0 : index
    %c2 = arith.constant 2 : index
    %11 = vector.load %arg1[%c0_11, %c2] : memref<8x128xf32, #tpu.memory_space<vmem>>, vector<8x126xf32>
    %c0_12 = arith.constant 0 : index
    %c0_13 = arith.constant 0 : index
    %12 = vector.load %arg2[%c0_12, %c0_13] : memref<8x128xf32, #tpu.memory_space<vmem>>, vector<8x2xf32>
    %13 = tpu.concatenate %11, %12 in 1 : vector<8x126xf32>, vector<8x2xf32> -> vector<8x128xf32>
    %c2_14 = arith.constant 2 : index
    %c0_15 = arith.constant 0 : index
    %c0_16 = arith.constant 0 : index
    %14 = vector.load %arg3[%c2_14, %c0_15, %c0_16] : memref<5x32x8xf32, #tpu.memory_space<vmem>>, vector<1x32x8xf32>
    %15 = vector.shape_cast %14 : vector<1x32x8xf32> to vector<32x8xf32>
    %cst_17 = arith.constant dense<0.000000e+00> : vector<32x128xf32>
    %16 = tpu.matmul %15, %13, %cst_17 {dimension_numbers = #tpu.dot_dimension_numbers<[1], [0], [0], [1], [0, 0, 1, 1], [], []>} : vector<32x8xf32>, vector<8x128xf32>, vector<32x128xf32> -> vector<32x128xf32>
    %17 = arith.addf %10, %16 : vector<32x128xf32>
    %c0_18 = arith.constant 0 : index
    %c3 = arith.constant 3 : index
    %18 = vector.load %arg1[%c0_18, %c3] : memref<8x128xf32, #tpu.memory_space<vmem>>, vector<8x125xf32>
    %c0_19 = arith.constant 0 : index
    %c0_20 = arith.constant 0 : index
    %19 = vector.load %arg2[%c0_19, %c0_20] : memref<8x128xf32, #tpu.memory_space<vmem>>, vector<8x3xf32>
    %20 = tpu.concatenate %18, %19 in 1 : vector<8x125xf32>, vector<8x3xf32> -> vector<8x128xf32>
    %c3_21 = arith.constant 3 : index
    %c0_22 = arith.constant 0 : index
    %c0_23 = arith.constant 0 : index
    %21 = vector.load %arg3[%c3_21, %c0_22, %c0_23] : memref<5x32x8xf32, #tpu.memory_space<vmem>>, vector<1x32x8xf32>
    %22 = vector.shape_cast %21 : vector<1x32x8xf32> to vector<32x8xf32>
    %cst_24 = arith.constant dense<0.000000e+00> : vector<32x128xf32>
    %23 = tpu.matmul %22, %20, %cst_24 {dimension_numbers = #tpu.dot_dimension_numbers<[1], [0], [0], [1], [0, 0, 1, 1], [], []>} : vector<32x8xf32>, vector<8x128xf32>, vector<32x128xf32> -> vector<32x128xf32>
    %24 = arith.addf %17, %23 : vector<32x128xf32>
    %c0_25 = arith.constant 0 : index
    %c4 = arith.constant 4 : index
    %25 = vector.load %arg1[%c0_25, %c4] : memref<8x128xf32, #tpu.memory_space<vmem>>, vector<8x124xf32>
    %c0_26 = arith.constant 0 : index
    %c0_27 = arith.constant 0 : index
    %26 = vector.load %arg2[%c0_26, %c0_27] : memref<8x128xf32, #tpu.memory_space<vmem>>, vector<8x4xf32>
    %27 = tpu.concatenate %25, %26 in 1 : vector<8x124xf32>, vector<8x4xf32> -> vector<8x128xf32>
    %c4_28 = arith.constant 4 : index
    %c0_29 = arith.constant 0 : index
    %c0_30 = arith.constant 0 : index
    %28 = vector.load %arg3[%c4_28, %c0_29, %c0_30] : memref<5x32x8xf32, #tpu.memory_space<vmem>>, vector<1x32x8xf32>
    %29 = vector.shape_cast %28 : vector<1x32x8xf32> to vector<32x8xf32>
    %cst_31 = arith.constant dense<0.000000e+00> : vector<32x128xf32>
    %30 = tpu.matmul %29, %27, %cst_31 {dimension_numbers = #tpu.dot_dimension_numbers<[1], [0], [0], [1], [0, 0, 1, 1], [], []>} : vector<32x8xf32>, vector<8x128xf32>, vector<32x128xf32> -> vector<32x128xf32>
    %31 = arith.addf %24, %30 : vector<32x128xf32>
    %c0_32 = arith.constant 0 : index
    %c0_33 = arith.constant 0 : index
    %32 = vector.load %arg4[%c0_32, %c0_33] : memref<32x1xf32, #tpu.memory_space<vmem>>, vector<32x1xf32>
    %33 = vector.broadcast %32 : vector<32x1xf32> to vector<32x128xf32>
    %34 = arith.addf %31, %33 : vector<32x128xf32>
    %cst_34 = arith.constant 0.000000e+00 : f32
    %35 = vector.broadcast %cst_34 : f32 to vector<32x128xf32>
    %36 = arith.cmpf ogt, %34, %35 : vector<32x128xf32>
    %cst_35 = arith.constant 0.00999999977 : f32
    %37 = vector.broadcast %cst_35 : f32 to vector<32x128xf32>
    %38 = arith.mulf %37, %34 : vector<32x128xf32>
    %39 = arith.select %36, %34, %38 : vector<32x128xi1>, vector<32x128xf32>
    %c0_36 = arith.constant 0 : index
    %c0_37 = arith.constant 0 : index
    %40 = vector.load %arg5[%c0_36, %c0_37] : memref<32x128xf32, #tpu.memory_space<vmem>>, vector<32x128xf32>
    tpu.vector_store %arg5[%c0_36, %c0_37], %39 {strides = array<i32>} : memref<32x128xf32, #tpu.memory_space<vmem>>, vector<32x128xf32>,
    return
  }
  func.func @transform_0(%arg0: i32) -> (i32, i32) {
    %c0_i32 = arith.constant 0 : i32
    %c0_i32_0 = arith.constant 0 : i32
    return %c0_i32, %arg0 : i32, i32
  }
  func.func @transform_1(%arg0: i32) -> (i32, i32) {
    %c1_i32 = arith.constant 1 : i32
    %0 = arith.addi %arg0, %c1_i32 : i32
    %c1_i32_0 = arith.constant 1 : i32
    %1 = arith.muli %0, %c1_i32_0 : i32
    %c0_i32 = arith.constant 0 : i32
    %c0_i32_1 = arith.constant 0 : i32
    return %c0_i32, %1 : i32, i32
  }
  func.func @transform_2(%arg0: i32) -> (i32, i32, i32) {
    %c0_i32 = arith.constant 0 : i32
    %c0_i32_0 = arith.constant 0 : i32
    %c0_i32_1 = arith.constant 0 : i32
    %c0_i32_2 = arith.constant 0 : i32
    return %c0_i32, %c0_i32_0, %c0_i32_1 : i32, i32, i32
  }
  func.func @transform_3(%arg0: i32) -> (i32, i32) {
    %c0_i32 = arith.constant 0 : i32
    %c0_i32_0 = arith.constant 0 : i32
    %c0_i32_1 = arith.constant 0 : i32
    return %c0_i32, %c0_i32_0 : i32, i32
  }
  func.func @transform_4(%arg0: i32) -> (i32, i32) {
    %c0_i32 = arith.constant 0 : i32
    %c0_i32_0 = arith.constant 0 : i32
    return %c0_i32, %arg0 : i32, i32
  }
}

</mosaic_0001>

<bundles_post_ra>
// kernel: conv_layer_forward.1
= control target key start
LH: loop header
LB: loop body
LE: loop exit
PB: predicated region body
PF: predicated region fallthrough
CT: control target
= control target key end

     0   :  { %s1146_s15 = smov 0   ;;  %s1148_s16 = smov 0   ;;  %s1293_s0 = inlined_call_operand.vmem [shape: f32[8,384], index: 0, kind: input, shape index: {}, may-alias: {0,1}]   ;;  %s1294_s1 = inlined_call_operand.vmem [shape: f32[8,384], index: 1, kind: input, shape index: {}, may-alias: {0,1}]   ;;  %s1295_s2 = inlined_call_operand.vmem [shape: f32[5,32,8], index: 2, kind: input, shape index: {}]   ;;  %s1296_s3 = inlined_call_operand.vmem [shape: f32[32,1], index: 3, kind: input, shape index: {}]   ;;  %s1297_s4 = inlined_call_operand.vmem [shape: f32[32,256], index: 4, kind: output, shape index: {}]  }
   0x1   :  { %s1150_s17 = smov 0  }
   0x2 LB: > { %s1159_s18 = sadd.s32 4294967295, %s1114_s17   ;;  %s1161_s19 = sadd.s32 1, %s1114_s17   ;;  %s1114_s17 = sphi %s1150_s17, %s1301_s17   ;;  %s1110_s16 = sphi %s1148_s16, %s1300_s16   ;;  %s1106_s15 = sphi %s1146_s15, %s1299_s15  }
   0x3   : > { %s114_s20 = ssub.s32 %s1114_s17, %s1161_s19  ;;  %s117_s21 = sadd.s32 1, %s1110_s16 }
   0x4   : > { %p115_p0 = scmp.eq.s32.totalorder %s114_s20, 0  ;;  %p127_p1 = scmp.ne.s32.totalorder %s1110_s16, %s1106_s15 }
   0x5   : > { %p128_p2 = scmp.eq.s32.totalorder %s1159_s18, 1  ;;  %p934_p3 = scmp.ge.s32.totalorder %s1114_s17, 1 }
   0x6   : > { %s1169_s22 = scalar_select %p115_p0, %s1110_s16, %s117_s21  }
   0x7   : > { %p1171_p4 = por %p128_p2, %p127_p1  ;;  %p174_p5 = scmp.lt.s32.totalorder %s1114_s17, 3 }
   0x9   : > { %p175_p6 = pnand %p934_p3, %p174_p5 }
   0xa   : > { %p203_p7 = scmp.lt.s32.totalorder (!%p175_p6), %s1159_s18, 2  ;;  %v938_v0 = vld [vmem:[%s1295_s2 + $0x20] sm:$0xff] (!%p175_p6)  ;;  %vm234_vm0 = vcmask (!%p175_p6), 64512   ;;  %s207_s26 = sadd.s32 (!%p175_p6), 1, %s1159_s18  ;;  %v772_v4 = vld [vmem:[%s1296_s3 + $0x8] sm:$0xff] (!%p175_p6)  ;;  %v1120_v6 = vmov (!%p175_p6), 0  }
   0xb   : > { %178 = sbr.rel (%p175_p6) target bundleno = 394 (0x18a), region = 36  ;;  %1005 = vmatprep.mubr.msk.f32.mxu1 (!%p175_p6), %vm234_vm0, %v938_v0  ;;  %v950_v1 = vld [vmem:[%s1295_s2 + $0x40] sm:$0xff] (!%p175_p6)  ;;  %p208_p8 = scmp.lt.s32.totalorder (!%p175_p6), %s207_s26, 2  ;;  %1091 = vset.pattern.permute.xlu1 (!%p175_p6), %v1120_v6  ;;  %v773_v7 = vld [vmem:[%s1296_s3 + $0x10] sm:$0xff] (!%p175_p6)  ;;  %v774_v8 = vld [vmem:[%s1296_s3 + $0x18] sm:$0xff] (!%p175_p6)  ;;  %vm435_vm1 = vcmask (!%p175_p6), 1031168  }
   0xc   : > { %1021 = vmatprep.mubr.msk.f32.mxu0 (!%p175_p6), %vm234_vm0, %v950_v1  ;;  %s1116_s8 = smov (!%p175_p6), 126   ;;  %s1117_s9 = smov (!%p175_p6), 127   ;;  %v771_v5 = vld [vmem:[%s1296_s3] sm:$0xff] (!%p175_p6)  ;;  %1090 = vset.pattern.permute.xlu0 (!%p175_p6), %v1120_v6  ;;  %vm227_vm2 = vcmask (!%p175_p6), 1039360   ;;  %v951_v15 = vld [vmem:[%s1295_s2 + $0x48] sm:$0xff] (!%p175_p6)  ;;  %vm549_vm3 = vcmask (!%p175_p6), 1022976  }
   0xd   : > { %s1118_s14 = smov (!%p175_p6), 125   ;;  %s1119_s17 = smov (!%p175_p6), 124   ;;  %v939_v16 = vld [vmem:[%s1295_s2 + $0x28] sm:$0xff] (!%p175_p6)  ;;  %v940_v17 = vld [vmem:[%s1295_s2 + $0x30] sm:$0xff] (!%p175_p6)  ;;  %v941_v21 = vld [vmem:[%s1295_s2 + $0x38] sm:$0xff] (!%p175_p6)  ;;  %vm663_vm4 = vcmask (!%p175_p6), 1014784  }
   0xe   : > { %v958_v22 = vld [vmem:[%s1295_s2 + $0x60] sm:$0xff] (!%p175_p6)  ;;  %v215_v26 = vld [vmem:[%s1295_s2 + $0x8] sm:$0xff] (!%p175_p6)  ;;  %v216_v29 = vld [vmem:[%s1295_s2 + $0x10] sm:$0xff] (!%p175_p6) }
   0xf   : > { %v214_v23 = vld [vmem:[%s1295_s2] sm:$0xff] (!%p175_p6)  ;;  %v959_v27 = vld [vmem:[%s1295_s2 + $0x68] sm:$0xff] (!%p175_p6)  ;;  %v960_v30 = vld [vmem:[%s1295_s2 + $0x70] sm:$0xff] (!%p175_p6) }
  0x10   : > { %v217_v31 = vld [vmem:[%s1295_s2 + $0x18] sm:$0xff] (!%p175_p6)  ;;  %v966_v33 = vld [vmem:[%s1295_s2 + $0x80] sm:$0xff] (!%p175_p6)  ;;  %v952_v34 = vld [vmem:[%s1295_s2 + $0x50] sm:$0xff] (!%p175_p6) }
  0x11   : > { %v961_v32 = vld [vmem:[%s1295_s2 + $0x78] sm:$0xff] (!%p175_p6)  ;;  %v967_v35 = vld [vmem:[%s1295_s2 + $0x88] sm:$0xff] (!%p175_p6)  ;;  %v968_v36 = vld [vmem:[%s1295_s2 + $0x90] sm:$0xff] (!%p175_p6) }
  0x12   : > { %s204_s29 = scalar_select %p203_p7, %s1159_s18, 2  ;;  %v953_v37 = vld [vmem:[%s1295_s2 + $0x58] sm:$0xff] }
  0x13   : > { %s1303_s26 = smov (!%p208_p8, %s207_s26), 2  ;;  %v969_v38 = vld [vmem:[%s1295_s2 + $0x98] sm:$0xff]  ;;  %s975_s28 = sshll.u32 (%p1171_p4), %s1159_s18, 3 }
  0x14   : > { %s936_s30 = sshll.u32 %s204_s29, 3  ;;  %s937_s10 = sshll.u32 %s1303_s26, 3 }
  0x15   : > { %s206_s7 = scalar_lea.vmem %s1293_s0, %s936_s30  ;;  %s211_s13 = scalar_lea.vmem %s1294_s1, %s937_s10 }
  0x16   : > { %v213_v2 = vld [vmem:[%s206_s7] sm:$0xff]  ;;  %s200_s26 = sand.u32 1, %s1106_s15   ;;  %s823_s5 = scalar_lea.vmem (%p1171_p4), %s1297_s4, %s975_s28 }
  0x17   : > { %429 = vrot.lane.b32.xlu1 %v213_v2, %s1116_s8  ;;  %220 = vrot.lane.b32.xlu0 %v213_v2, %s1117_s9  ;;  %v218_v3 = vld [vmem:[%s211_s13] sm:$0xff]  ;;  %s935_s27 = sshll.u32 %s200_s26, 5 }
  0x18   : > { %s202_s15 = scalar_lea.vmem [#allocation2], %s935_s27 }
  0x1b   : > { %432 = vrot.lane.b32.xlu1 %v218_v3, %s1116_s8  ;;  %224 = vrot.lane.b32.xlu0 %v218_v3, %s1117_s9 }
  0x1f   : > { %546 = vrot.lane.b32.xlu1 %v218_v3, %s1118_s14  ;;  %543 = vrot.lane.b32.xlu0 %v213_v2, %s1118_s14 }
  0x23   : > { %660 = vrot.lane.b32.xlu1 %v218_v3, %s1119_s17  ;;  %657 = vrot.lane.b32.xlu0 %v213_v2, %s1119_s17 }
  0x27   : > { %782 = vperm.xlu1 %1091, %v772_v4   ;;  %777 = vperm.xlu0 %1090, %v771_v5  }
  0x2b   : > { %787 = vperm.xlu1 %1091, %v773_v7   ;;  %792 = vperm.xlu0 %1090, %v774_v8  }
  0x89   : > { %v430_v9 = vpop.permute.xlu1 %429  ;;  %v221_v10 = vpop.permute.xlu0 %220 }
  0x8d   : > { %v433_v11 = vpop.permute.xlu1 %432  ;;  %v225_v12 = vpop.permute.xlu0 %224 }
  0x8e   : > { %v436_v13 = vsel %vm435_vm1, %v430_v9, %v433_v11  ;;  %v228_v14 = vsel %vm227_vm2, %v221_v10, %v225_v12 }
  0x8f   : > { %1003 = vmatprep.subr.mxu1 %v228_v14  ;;  %1019 = vmatprep.subr.mxu0 %v436_v13 }
  0x90   : > { %1004 = vmatpush3.msra.mxu1 %v228_v14  ;;  %1020 = vmatpush3.msra.mxu0 %v436_v13 }
  0x91   : > { %1022 = vmatmul.mubr.msk.f32.vlgmr.msra.gmra.mrb[0].mxu0 %vm234_vm0, %v951_v15  ;;  %v547_v18 = vpop.permute.xlu1 %546  ;;  %1006 = vmatmul.mubr.msk.f32.vlgmr.msra.gmra.mrb[0].mxu1 %vm234_vm0, %v939_v16  ;;  %v544_v19 = vpop.permute.xlu0 %543 }
  0x92   : > { %1011 = vmatprep.subr.mxu1 %v213_v2  ;;  %v550_v20 = vsel %vm549_vm3, %v544_v19, %v547_v18  ;;  %1008 = vmatprep.mubr.msk.f32.mxu1 %vm234_vm0, %v940_v17 }
  0x93   : > { %1012 = vmatpush3.msra.mxu1 %v213_v2  ;;  %1027 = vmatprep.subr.mxu0 %v550_v20 }
  0x94   : > { %1043 = vmatprep.subr.mxu1 %v436_v13  ;;  %1028 = vmatpush3.msra.mxu0 %v550_v20 }
  0x95   : > { %1009 = vmatmul.mubr.msk.f32.gmra.mrb[2].mxu1 %vm234_vm0, %v941_v21  ;;  %1029 = vmatprep.mubr.msk.f32.mxu0 %vm234_vm0, %v958_v22  ;;  %v661_v24 = vpop.permute.xlu1 %660  ;;  %v658_v25 = vpop.permute.xlu0 %657 }
  0x96   : > { %1013 = vmatprep.mubr.msk.f32.mxu1 %vm234_vm0, %v214_v23  ;;  %v664_v28 = vsel %vm663_vm4, %v658_v25, %v661_v24 }
  0x97   : > { %1035 = vmatprep.subr.mxu0 %v664_v28 }
  0x99   : > { %1014 = vmatmul.mubr.msk.f32.vlgmr.msra.gmra.mrb[0].mxu1 %vm234_vm0, %v215_v26  ;;  %1030 = vmatmul.mubr.msk.f32.vlgmr.msra.gmra.mrb[0].mxu0 %vm234_vm0, %v959_v27 }
  0x9a   : > { %1044 = vmatpush3.msra.mxu1 %v436_v13  ;;  %1036 = vmatpush3.msra.mxu0 %v664_v28 }
  0x9b   : > { %1016 = vmatprep.mubr.msk.f32.mxu1 %vm234_vm0, %v216_v29  ;;  %1032 = vmatprep.mubr.msk.f32.mxu0 %vm234_vm0, %v960_v30 }
  0x9d   : > { %1017 = vmatmul.mubr.msk.f32.gmra.mrb[2].mxu1 %vm234_vm0, %v217_v31  ;;  %1033 = vmatmul.mubr.msk.f32.gmra.mrb[2].mxu0 %vm234_vm0, %v961_v32 }
  0x9e   : > { %1037 = vmatprep.mubr.msk.f32.mxu0 %vm234_vm0, %v966_v33  ;;  %1024 = vmatprep.mubr.msk.f32.mxu1 %vm234_vm0, %v952_v34 }
  0xa1   : > { %1038 = vmatmul.mubr.msk.f32.vlgmr.msra.gmra.mrb[0].mxu0 %vm234_vm0, %v967_v35 }
  0xa2   : > { %1040 = vmatprep.mubr.msk.f32.mxu0 %vm234_vm0, %v968_v36 }
  0xa5   : > { %1025 = vmatmul.mubr.msk.f32.vlgmr.msra.gmra.mrb[2].mxu1 %vm234_vm0, %v953_v37  ;;  %1041 = vmatmul.mubr.msk.f32.gmra.mrb[2].mxu0 %vm234_vm0, %v969_v38 }
  0xa6   : > { %v778_v42 = vpop.permute.xlu0 %777  ;;  %v783_v45 = vpop.permute.xlu1 %782 }
  0xaa   : > { %v793_v57 = vpop.permute.xlu0 %792  ;;  %v788_v59 = vpop.permute.xlu1 %787 }
 0x16c   : > { %v1015_v39 = vpop.f32.mrb[0].mxu1 }
 0x16d   : > { %v410_v40 = vpop.f32.mrb[1].mxu1 }
 0x174   : > { %v1039_v41 = vpop.f32.mrb[0].mxu0 }
 0x175   : > { %v1045_v43 = vadd.f32 %v1039_v41, %v1015_v39  ;;  %v748_v44 = vpop.f32.mrb[1].mxu0 }
 0x176   : > { %v1046_v46 = vadd.f32 %v748_v44, %v410_v40 }
 0x177   : > { %v796_v47 = vadd.f32 %v1045_v43, %v783_v45 }
 0x178   : > { %v795_v48 = vadd.f32 %v1046_v46, %v778_v42  ;;  %v1026_v49 = vpop.f32.mrb[2].mxu1  ;;  %v1042_v50 = vpop.f32.mrb[2].mxu0 }
 0x179   : > { %vm800_vm5 = vcmp.gt.f32.partialorder %v796_v47, 0.0  ;;  %v804_v51 = vmul.f32 0.01, %v796_v47  ;;  %v1047_v52 = vadd.f32 %v1042_v50, %v1026_v49  ;;  %v530_v53 = vpop.f32.mrb[3].mxu1  ;;  %v758_v54 = vpop.f32.mrb[3].mxu0 }
 0x17a   : > { %vm799_vm6 = vcmp.gt.f32.partialorder %v795_v48, 0.0  ;;  %v803_v55 = vmul.f32 0.01, %v795_v48  ;;  %v1048_v56 = vadd.f32 %v758_v54, %v530_v53 }
 0x17b   : > { %v808_v58 = vsel %vm800_vm5, %v796_v47, %v804_v51  ;;  %v798_v60 = vadd.f32 %v1047_v52, %v793_v57  ;;  %821 = sbr.rel (!%p1171_p4) target bundleno = 394 (0x18a), region = 40 }
 0x17c   : > { %812 = vst [vmem:[%s202_s15 + $0x8] sm:$0xff] %v808_v58  ;;  %v807_v61 = vsel %vm799_vm6, %v795_v48, %v803_v55  ;;  %v797_v62 = vadd.f32 %v1048_v56, %v788_v59 }
 0x17d   : > { %811 = vst [vmem:[%s202_s15] sm:$0xff] %v807_v61  ;;  %vm802_vm7 = vcmp.gt.f32.partialorder %v798_v60, 0.0  ;;  %v806_v63 = vmul.f32 0.01, %v798_v60 }
 0x17e   : > { %vm801_vm8 = vcmp.gt.f32.partialorder %v797_v62, 0.0  ;;  %v805_v0 = vmul.f32 0.01, %v797_v62 }
 0x17f   : > { %v810_v1 = vsel %vm802_vm7, %v798_v60, %v806_v63 }
 0x180   : > { %v809_v2 = vsel %vm801_vm8, %v797_v62, %v805_v0  ;;  %814 = vst [vmem:[%s202_s15 + $0x18] sm:$0xff] %v810_v1 }
 0x181   : > { %813 = vst [vmem:[%s202_s15 + $0x10] sm:$0xff] %v809_v2 }
 0x183   : > { %v859_v4 = vld [vmem:[%s202_s15 + $0x8] sm:$0xff] }
 0x184   : > { %v857_v3 = vld [vmem:[%s202_s15] sm:$0xff]  ;;  %860 = vst [vmem:[%s823_s5 + $0x10] sm:$0xff] %v859_v4 }
 0x185   : > { %858 = vst [vmem:[%s823_s5] sm:$0xff] %v857_v3 }
 0x187   : > { %v863_v6 = vld [vmem:[%s202_s15 + $0x18] sm:$0xff] }
 0x188   : > { %v861_v5 = vld [vmem:[%s202_s15 + $0x10] sm:$0xff]  ;;  %864 = vst [vmem:[%s823_s5 + $0x30] sm:$0xff] %v863_v6 }
 0x189   : > { %862 = vst [vmem:[%s823_s5 + $0x20] sm:$0xff] %v861_v5 }
 0x18a PF: > { %p11_p9 = scmp.ge.s32.totalorder %s1161_s19, 4   ;;  %s1299_s15 = smov %s1110_s16 }
 0x18b   : > { %s1300_s16 = smov %s1169_s22  ;;  %s1301_s17 = smov %s1161_s19 }
 0x18c   :  { %13 = sbr.rel (!%p11_p9) target bundleno = 2 (0x2), region = 111 }

</bundles_post_ra>
